<compile_context>
chip_gen: v7x
topology: tpu7x:2x2x1
jax: 0.10.0
libtpu: 0.0.40
codegen_flags: <defaults>
</compile_context>

<pallas_src>
import functools

import jax
import jax.numpy as jnp
import numpy as np
from jax import lax
from jax.experimental import pallas as pl
from jax.experimental.pallas import tpu as pltpu


def _round_up(x, m):
    return ((x + m - 1) // m) * m


# ----------------------------------------------------------------------------
# Fused kernel.  rows = batch * n_events (sublanes), lanes = rfft coeffs /
# output samples.
#   1) Gaussian band-pass (start + end) applied to the shared rfft spectrum:
#        filt = exp(-(f - mean)^2 / (2*std^2 + 1e-12)),  f = linspace(0,1,C)
#   2) exponential_decay + linear upsample (align_corners=False) crossfade:
#        d     = base + sigmoid(decay) * (1 - base) * 0.96 + 1e-12
#        y_t   = d^(t+1)
#        src   = max((j + 0.5) * n_frames / n_samples - 0.5, 0)
#        i0    = floor(src); w = src - i0; i1 = min(i0 + 1, n_frames - 1)
#        amp_j = y_{i0}*(1-w) + y_{i1}*w = y_{i0}*(a + b*d),
#                a = 1 - w + [clamped]*w, b = [not clamped]*w
# ----------------------------------------------------------------------------
def _fused_kernel(par_ref, re_ref, im_ref, ore_ref, oim_ref, cross_ref, *,
                  n_coeffs, n_frames, n_samples, base_resonance):
    re = re_ref[...]                                   # (TR, C_pad)
    im = im_ref[...]
    tr, c_pad = re.shape

    par = par_ref[...]                                 # (TR, 8) packed scalars
    sm = par[:, 0:1]
    ss = par[:, 1:2]
    em = par[:, 2:3]
    es = par[:, 3:4]
    dec = par[:, 4:5]

    # Lane-only frequency axis (1, C_pad): linspace(0, 1, n_coeffs). Padded
    # lanes run past 1.0 but multiply the zero-padded spectrum -> sliced off.
    freqs = lax.broadcasted_iota(jnp.int32, (1, c_pad), 1).astype(jnp.float32)
    freqs = freqs * (1.0 / float(max(n_coeffs - 1, 1)))

    # ---- start filter ----
    s_inv = 1.0 / (2.0 * ss * ss + 1e-12)              # (TR, 1), exact
    ds = freqs - sm                                    # (TR, C_pad)
    s_filt = jnp.exp(-(ds * ds) * s_inv)
    ore_ref[0, :, :] = re * s_filt
    oim_ref[0, :, :] = im * s_filt

    # ---- end filter ----
    e_inv = 1.0 / (2.0 * es * es + 1e-12)
    de = freqs - em
    e_filt = jnp.exp(-(de * de) * e_inv)
    ore_ref[1, :, :] = re * e_filt
    oim_ref[1, :, :] = im * e_filt

    # ---- crossfade envelope (and its inverse) ----
    n_pad = cross_ref.shape[-1]
    sig = jax.nn.sigmoid(dec)                          # (TR, 1)
    resonance_factor = (1.0 - base_resonance) * 0.96
    deps = base_resonance + sig * resonance_factor + 1e-12
    logd = jnp.log(deps)                               # (TR, 1)

    # Row-invariant interpolation bookkeeping at (1, n_pad) only.
    j = lax.broadcasted_iota(jnp.int32, (1, n_pad), 1).astype(jnp.float32)
    scale = float(n_frames) / float(n_samples)
    src = jnp.maximum((j + 0.5) * scale - 0.5, 0.0)
    i0 = jnp.floor(src)
    w = src - i0
    clamped = (i0 + 1.0) >= float(n_frames)
    a_lane = 1.0 - w + jnp.where(clamped, w, 0.0)      # (1, n_pad)
    b_lane = jnp.where(clamped, 0.0, w)                # (1, n_pad)

    # deps^(i0+1): a single EUP exp per output element; the rest is VPU slack.
    v0 = jnp.exp((i0 + 1.0) * logd)                    # (TR, n_pad)
    amp = v0 * (a_lane + b_lane * deps)
    cross_ref[0, :, :] = amp
    cross_ref[1, :, :] = 1.0 - amp


# ----------------------------------------------------------------------------
# Module-equivalent forward.
# ----------------------------------------------------------------------------
def evolving_filtered_resonance_forward(
        resonances, decays,
        start_filter_means, start_filter_stds,
        end_filter_means, end_filter_stds,
        *, base_crossfade_resonance, crossfade_frames, n_samples):
    b, e, n = resonances.shape
    assert n == n_samples
    assert decays.shape[:2] == (b, e)
    r = b * e
    c = n // 2 + 1
    c_pad = _round_up(c, 128)
    n_pad = _round_up(n, 128)

    # Single shared rfft (start & end filters reuse the same spectrum).
    spec = jnp.fft.rfft(resonances.reshape(r, n).astype(jnp.float32), axis=-1)
    re = jnp.pad(jnp.real(spec).astype(jnp.float32), ((0, 0), (0, c_pad - c)))
    im = jnp.pad(jnp.imag(spec).astype(jnp.float32), ((0, 0), (0, c_pad - c)))

    # Pack the five per-row scalars into one (r, 8) block -> one DMA per step.
    params = jnp.concatenate([
        start_filter_means.reshape(r, 1), start_filter_stds.reshape(r, 1),
        end_filter_means.reshape(r, 1), end_filter_stds.reshape(r, 1),
        decays.reshape(r, 1)], axis=-1).astype(jnp.float32)
    params = jnp.pad(params, ((0, 0), (0, 8 - params.shape[-1])))

    # ---- generation-aware tiling ----
    try:
        vmem_capacity = pltpu.get_tpu_info().vmem_capacity_bytes
    except Exception:  # pragma: no cover - conservative fallback (v7x-safe)
        vmem_capacity = 64 * 1024 * 1024
    big_vmem = vmem_capacity >= 100 * 1024 * 1024      # v5e / v6e: 128 MiB parts
    budget = (48 if big_vmem else 24) * 1024 * 1024
    vmem_limit = (96 if big_vmem else 32) * 1024 * 1024
    tr_cap = 512 if big_vmem else 256

    # f32 bytes per row per buffer: params block (lane-padded to 128 lanes)
    # + 2 spectrum inputs + 4 spectrum outputs + 2 envelope planes.
    bytes_per_row = 4 * (128 + 6 * c_pad + 2 * n_pad)

    tr = min(_round_up(r, 8), tr_cap)
    # Ensure >= 2 grid steps so Mosaic can shard rows across both v7x
    # TensorCores (costs only one extra ~0.35us grid step elsewhere).
    if _round_up(r, 8) >= 16:
        tr = min(tr, _round_up((r + 1) // 2, 8))
    while tr > 8 and 2 * tr * bytes_per_row > budget:
        tr = max(8, _round_up(tr // 2, 8))
    if 2 * tr * bytes_per_row > vmem_limit:
        # TODO(synk): add a lane-dimension grid axis (chunking c_pad / n_pad)
        # for very large n_samples instead of failing; not needed at current sizes.
        raise ValueError("EvolvingFilteredResonance: minimum 8-row tile exceeds "
                         "the VMEM limit; lane tiling required.")

    r_pad = _round_up(r, tr)
    if r_pad != r:
        pad = ((0, r_pad - r), (0, 0))
        params = jnp.pad(params, pad)
        re = jnp.pad(re, pad)
        im = jnp.pad(im, pad)

    grid = (r_pad // tr,)
    in_specs = [
        pl.BlockSpec((tr, 8), lambda i: (i, 0)),
        pl.BlockSpec((tr, c_pad), lambda i: (i, 0)),
        pl.BlockSpec((tr, c_pad), lambda i: (i, 0)),
    ]
    out_specs = (
        pl.BlockSpec((2, tr, c_pad), lambda i: (0, i, 0)),
        pl.BlockSpec((2, tr, c_pad), lambda i: (0, i, 0)),
        pl.BlockSpec((2, tr, n_pad), lambda i: (0, i, 0)),
    )

    ore, oim, cross = pl.pallas_call(
        functools.partial(_fused_kernel,
                          n_coeffs=c,
                          n_frames=crossfade_frames,
                          n_samples=n_samples,
                          base_resonance=base_crossfade_resonance),
        out_shape=(
            jax.ShapeDtypeStruct((2, r_pad, c_pad), jnp.float32),
            jax.ShapeDtypeStruct((2, r_pad, c_pad), jnp.float32),
            jax.ShapeDtypeStruct((2, r_pad, n_pad), jnp.float32),
        ),
        grid=grid,
        in_specs=in_specs,
        out_specs=out_specs,
        compiler_params=pltpu.CompilerParams(
            dimension_semantics=("parallel",),
            vmem_limit_bytes=vmem_limit),
    )(params, re, im)

    # Single batched irfft over the stacked (start, end) filtered spectra —
    # the kernel already laid them out contiguously; no XLA concatenate.
    filt_spec = ore[:, :r, :c] + 1j * oim[:, :r, :c]          # (2, r, c)
    recon = jnp.fft.irfft(filt_spec, n=n, axis=-1).astype(jnp.float32)
    start_resonance = recon[0].reshape(b, e, n)
    end_resonance = recon[1].reshape(b, e, n)

    # Kernel already produced both planes (cross, 1-cross); only the trailing
    # dim-2 layout change happens in XLA.
    filt_crossfade_stacked = jnp.moveaxis(
        cross[:, :r, :n], 0, -1).reshape(b, e, n, 2)

    return start_resonance, end_resonance, filt_crossfade_stacked


# ----------------------------------------------------------------------------
# Pure-JAX reference (mirrors the PyTorch module's math) for a sanity check.
# ----------------------------------------------------------------------------
def _reference_forward(resonances, decays, sm, ss, em, es, *,
                       base_crossfade_resonance, crossfade_frames, n_samples):
    b, e, n = resonances.shape
    c = n // 2 + 1
    freqs = jnp.linspace(0.0, 1.0, c)[None, None, :]
    spec = jnp.fft.rfft(resonances.astype(jnp.float32), axis=-1)

    def bandpass(mean, std):
        filt = jnp.exp(-((freqs - mean) ** 2) / (2.0 * std ** 2 + 1e-12))
        return jnp.fft.irfft(spec * filt, n=n, axis=-1).astype(jnp.float32)

    start = bandpass(sm, ss)
    end = bandpass(em, es)

    sig = jax.nn.sigmoid(decays.reshape(b, e, 1).astype(jnp.float32))
    d = base_crossfade_resonance + sig * (1.0 - base_crossfade_resonance) * 0.96 + 1e-12
    t = jnp.arange(1, crossfade_frames + 1, dtype=jnp.float32)
    frames = d ** t                                   # (b, e, n_frames)
    j = jnp.arange(n_samples, dtype=jnp.float32)
    src = jnp.maximum((j + 0.5) * (crossfade_frames / n_samples) - 0.5, 0.0)
    i0 = jnp.floor(src).astype(jnp.int32)
    i1 = jnp.minimum(i0 + 1, crossfade_frames - 1)
    w = src - i0.astype(jnp.float32)
    amp = frames[..., i0] * (1.0 - w) + frames[..., i1] * w
    stacked = jnp.stack([amp, 1.0 - amp], axis=-1)
    return start, end, stacked


if __name__ == "__main__":
    # Deterministic hyperparameters (constructor args).
    base_crossfade_resonance = 0.02
    crossfade_frames = 8
    n_samples = 256

    # Small deterministic inputs.
    batch, n_events = 2, 4
    key = jax.random.PRNGKey(0)
    k1, k2, k3, k4, k5, k6 = jax.random.split(key, 6)
    resonances = jax.random.normal(k1, (batch, n_events, n_samples), jnp.float32)
    decays = jax.random.normal(k2, (batch, n_events, 1), jnp.float32)
    start_means = jax.nn.sigmoid(jax.random.normal(k3, (batch, n_events, 1))) * 0.5
    start_stds = jax.nn.sigmoid(jax.random.normal(k4, (batch, n_events, 1))) * 0.2 + 0.01
    end_means = jax.nn.sigmoid(jax.random.normal(k5, (batch, n_events, 1))) * 0.5
    end_stds = jax.nn.sigmoid(jax.random.normal(k6, (batch, n_events, 1))) * 0.2 + 0.01

    fwd = jax.jit(functools.partial(
        evolving_filtered_resonance_forward,
        base_crossfade_resonance=base_crossfade_resonance,
        crossfade_frames=crossfade_frames,
        n_samples=n_samples))

    start_res, end_res, crossfade = fwd(
        resonances, decays, start_means, start_stds, end_means, end_stds)
    jax.block_until_ready((start_res, end_res, crossfade))

    assert start_res.shape == (batch, n_events, n_samples)
    assert end_res.shape == (batch, n_events, n_samples)
    assert crossfade.shape == (batch, n_events, n_samples, 2)
    assert bool(jnp.all(jnp.isfinite(start_res)))
    assert bool(jnp.all(jnp.isfinite(end_res)))
    assert bool(jnp.all(jnp.isfinite(crossfade)))

    ref_start, ref_end, ref_cross = _reference_forward(
        resonances, decays, start_means, start_stds, end_means, end_stds,
        base_crossfade_resonance=base_crossfade_resonance,
        crossfade_frames=crossfade_frames,
        n_samples=n_samples)
    np.testing.assert_allclose(np.asarray(start_res), np.asarray(ref_start),
                               rtol=1e-3, atol=1e-3)
    np.testing.assert_allclose(np.asarray(end_res), np.asarray(ref_end),
                               rtol=1e-3, atol=1e-3)
    np.testing.assert_allclose(np.asarray(crossfade), np.asarray(ref_cross),
                               rtol=1e-3, atol=1e-3)

    print("KERNEL_OK")
</pallas_src>

<mosaic_0001>
module attributes {stable_mosaic.version = 11 : i64} {
  func.func @_fused_kernel(%arg0: i32, %arg1: memref<8x8xf32, #tpu.memory_space<vmem>>, %arg2: memref<8x256xf32, #tpu.memory_space<vmem>>, %arg3: memref<8x256xf32, #tpu.memory_space<vmem>>, %arg4: memref<2x8x256xf32, #tpu.memory_space<vmem>>, %arg5: memref<2x8x256xf32, #tpu.memory_space<vmem>>, %arg6: memref<2x8x256xf32, #tpu.memory_space<vmem>>) attributes {dimension_semantics = [#tpu.dimension_semantics<parallel>], iteration_bounds = array<i64: 1>, scalar_prefetch = 0 : i64, scratch_operands = 0 : i64, tpu.core_type = #tpu.core_type<tc>, window_params = [{transform_indices = @transform_0, window_bounds = array<i64: 8, 8>}, {transform_indices = @transform_1, window_bounds = array<i64: 8, 256>}, {transform_indices = @transform_2, window_bounds = array<i64: 8, 256>}, {transform_indices = @transform_3, window_bounds = array<i64: 2, 8, 256>}, {transform_indices = @transform_4, window_bounds = array<i64: 2, 8, 256>}, {transform_indices = @transform_5, window_bounds = array<i64: 2, 8, 256>}]} {
    %c0 = arith.constant 0 : index
    %c0_0 = arith.constant 0 : index
    %0 = vector.load %arg2[%c0, %c0_0] : memref<8x256xf32, #tpu.memory_space<vmem>>, vector<8x256xf32>
    %c0_1 = arith.constant 0 : index
    %c0_2 = arith.constant 0 : index
    %1 = vector.load %arg3[%c0_1, %c0_2] : memref<8x256xf32, #tpu.memory_space<vmem>>, vector<8x256xf32>
    %c0_3 = arith.constant 0 : index
    %c0_4 = arith.constant 0 : index
    %2 = vector.load %arg1[%c0_3, %c0_4] : memref<8x8xf32, #tpu.memory_space<vmem>>, vector<8x8xf32>
    %3 = vector.extract_strided_slice %2 {offsets = [0, 0], sizes = [8, 1], strides = [1, 1]} : vector<8x8xf32> to vector<8x1xf32>
    %4 = vector.extract_strided_slice %2 {offsets = [0, 1], sizes = [8, 1], strides = [1, 1]} : vector<8x8xf32> to vector<8x1xf32>
    %5 = vector.extract_strided_slice %2 {offsets = [0, 2], sizes = [8, 1], strides = [1, 1]} : vector<8x8xf32> to vector<8x1xf32>
    %6 = vector.extract_strided_slice %2 {offsets = [0, 3], sizes = [8, 1], strides = [1, 1]} : vector<8x8xf32> to vector<8x1xf32>
    %7 = vector.extract_strided_slice %2 {offsets = [0, 4], sizes = [8, 1], strides = [1, 1]} : vector<8x8xf32> to vector<8x1xf32>
    %8 = tpu.iota {dimensions = array<i32: 1>} : vector<1x256xi32>
    %9 = arith.sitofp %8 : vector<1x256xi32> to vector<1x256xf32>
    %cst = arith.constant 7.812500e-03 : f32
    %10 = vector.broadcast %cst : f32 to vector<1x256xf32>
    %11 = arith.mulf %9, %10 : vector<1x256xf32>
    %cst_5 = arith.constant 2.000000e+00 : f32
    %12 = vector.broadcast %cst_5 : f32 to vector<8x1xf32>
    %13 = arith.mulf %12, %4 : vector<8x1xf32>
    %14 = arith.mulf %13, %4 : vector<8x1xf32>
    %cst_6 = arith.constant 9.99999996E-13 : f32
    %15 = vector.broadcast %cst_6 : f32 to vector<8x1xf32>
    %16 = arith.addf %14, %15 : vector<8x1xf32>
    %cst_7 = arith.constant 1.000000e+00 : f32
    %17 = vector.broadcast %cst_7 : f32 to vector<8x1xf32>
    %18 = arith.divf %17, %16 : vector<8x1xf32>
    %19 = vector.broadcast %11 : vector<1x256xf32> to vector<8x256xf32>
    %20 = vector.broadcast %3 : vector<8x1xf32> to vector<8x256xf32>
    %21 = arith.subf %19, %20 : vector<8x256xf32>
    %22 = arith.mulf %21, %21 : vector<8x256xf32>
    %cst_8 = arith.constant 0.000000e+00 : f32
    %23 = vector.broadcast %cst_8 : f32 to vector<8x256xf32>
    %24 = arith.subf %23, %22 : vector<8x256xf32>
    %25 = vector.broadcast %18 : vector<8x1xf32> to vector<8x256xf32>
    %26 = arith.mulf %24, %25 : vector<8x256xf32>
    %27 = math.exp %26 : vector<8x256xf32>
    %28 = arith.mulf %0, %27 : vector<8x256xf32>
    %c0_9 = arith.constant 0 : index
    %c0_10 = arith.constant 0 : index
    %c0_11 = arith.constant 0 : index
    %29 = vector.load %arg4[%c0_9, %c0_10, %c0_11] : memref<2x8x256xf32, #tpu.memory_space<vmem>>, vector<1x8x256xf32>
    %30 = vector.shape_cast %29 : vector<1x8x256xf32> to vector<8x256xf32>
    %31 = vector.shape_cast %28 : vector<8x256xf32> to vector<1x8x256xf32>
    tpu.vector_store %arg4[%c0_9, %c0_10, %c0_11], %31 {strides = array<i32>} : memref<2x8x256xf32, #tpu.memory_space<vmem>>, vector<1x8x256xf32>,
    %32 = arith.mulf %1, %27 : vector<8x256xf32>
    %c0_12 = arith.constant 0 : index
    %c0_13 = arith.constant 0 : index
    %c0_14 = arith.constant 0 : index
    %33 = vector.load %arg5[%c0_12, %c0_13, %c0_14] : memref<2x8x256xf32, #tpu.memory_space<vmem>>, vector<1x8x256xf32>
    %34 = vector.shape_cast %33 : vector<1x8x256xf32> to vector<8x256xf32>
    %35 = vector.shape_cast %32 : vector<8x256xf32> to vector<1x8x256xf32>
    tpu.vector_store %arg5[%c0_12, %c0_13, %c0_14], %35 {strides = array<i32>} : memref<2x8x256xf32, #tpu.memory_space<vmem>>, vector<1x8x256xf32>,
    %cst_15 = arith.constant 2.000000e+00 : f32
    %36 = vector.broadcast %cst_15 : f32 to vector<8x1xf32>
    %37 = arith.mulf %36, %6 : vector<8x1xf32>
    %38 = arith.mulf %37, %6 : vector<8x1xf32>
    %cst_16 = arith.constant 9.99999996E-13 : f32
    %39 = vector.broadcast %cst_16 : f32 to vector<8x1xf32>
    %40 = arith.addf %38, %39 : vector<8x1xf32>
    %cst_17 = arith.constant 1.000000e+00 : f32
    %41 = vector.broadcast %cst_17 : f32 to vector<8x1xf32>
    %42 = arith.divf %41, %40 : vector<8x1xf32>
    %43 = vector.broadcast %11 : vector<1x256xf32> to vector<8x256xf32>
    %44 = vector.broadcast %5 : vector<8x1xf32> to vector<8x256xf32>
    %45 = arith.subf %43, %44 : vector<8x256xf32>
    %46 = arith.mulf %45, %45 : vector<8x256xf32>
    %cst_18 = arith.constant 0.000000e+00 : f32
    %47 = vector.broadcast %cst_18 : f32 to vector<8x256xf32>
    %48 = arith.subf %47, %46 : vector<8x256xf32>
    %49 = vector.broadcast %42 : vector<8x1xf32> to vector<8x256xf32>
    %50 = arith.mulf %48, %49 : vector<8x256xf32>
    %51 = math.exp %50 : vector<8x256xf32>
    %52 = arith.mulf %0, %51 : vector<8x256xf32>
    %c1 = arith.constant 1 : index
    %c0_19 = arith.constant 0 : index
    %c0_20 = arith.constant 0 : index
    %53 = vector.load %arg4[%c1, %c0_19, %c0_20] : memref<2x8x256xf32, #tpu.memory_space<vmem>>, vector<1x8x256xf32>
    %54 = vector.shape_cast %53 : vector<1x8x256xf32> to vector<8x256xf32>
    %55 = vector.shape_cast %52 : vector<8x256xf32> to vector<1x8x256xf32>
    tpu.vector_store %arg4[%c1, %c0_19, %c0_20], %55 {strides = array<i32>} : memref<2x8x256xf32, #tpu.memory_space<vmem>>, vector<1x8x256xf32>,
    %56 = arith.mulf %1, %51 : vector<8x256xf32>
    %c1_21 = arith.constant 1 : index
    %c0_22 = arith.constant 0 : index
    %c0_23 = arith.constant 0 : index
    %57 = vector.load %arg5[%c1_21, %c0_22, %c0_23] : memref<2x8x256xf32, #tpu.memory_space<vmem>>, vector<1x8x256xf32>
    %58 = vector.shape_cast %57 : vector<1x8x256xf32> to vector<8x256xf32>
    %59 = vector.shape_cast %56 : vector<8x256xf32> to vector<1x8x256xf32>
    tpu.vector_store %arg5[%c1_21, %c0_22, %c0_23], %59 {strides = array<i32>} : memref<2x8x256xf32, #tpu.memory_space<vmem>>, vector<1x8x256xf32>,
    %60 = arith.negf %7 : vector<8x1xf32>
    %61 = math.exp %60 : vector<8x1xf32>
    %cst_24 = arith.constant 1.000000e+00 : f32
    %62 = vector.broadcast %cst_24 : f32 to vector<8x1xf32>
    %63 = arith.addf %62, %61 : vector<8x1xf32>
    %64 = arith.divf %62, %63 : vector<8x1xf32>
    %cst_25 = arith.constant 9.408000e-01 : f32
    %65 = vector.broadcast %cst_25 : f32 to vector<8x1xf32>
    %66 = arith.mulf %64, %65 : vector<8x1xf32>
    %cst_26 = arith.constant 2.000000e-02 : f32
    %67 = vector.broadcast %cst_26 : f32 to vector<8x1xf32>
    %68 = arith.addf %67, %66 : vector<8x1xf32>
    %cst_27 = arith.constant 9.99999996E-13 : f32
    %69 = vector.broadcast %cst_27 : f32 to vector<8x1xf32>
    %70 = arith.addf %68, %69 : vector<8x1xf32>
    %71 = math.log %70 : vector<8x1xf32>
    %72 = tpu.iota {dimensions = array<i32: 1>} : vector<1x256xi32>
    %73 = arith.sitofp %72 : vector<1x256xi32> to vector<1x256xf32>
    %cst_28 = arith.constant 5.000000e-01 : f32
    %74 = vector.broadcast %cst_28 : f32 to vector<1x256xf32>
    %75 = arith.addf %73, %74 : vector<1x256xf32>
    %cst_29 = arith.constant 3.125000e-02 : f32
    %76 = vector.broadcast %cst_29 : f32 to vector<1x256xf32>
    %77 = arith.mulf %75, %76 : vector<1x256xf32>
    %cst_30 = arith.constant 5.000000e-01 : f32
    %78 = vector.broadcast %cst_30 : f32 to vector<1x256xf32>
    %79 = arith.subf %77, %78 : vector<1x256xf32>
    %cst_31 = arith.constant 0.000000e+00 : f32
    %80 = vector.broadcast %cst_31 : f32 to vector<1x256xf32>
    %81 = arith.maximumf %79, %80 : vector<1x256xf32>
    %82 = math.floor %81 : vector<1x256xf32>
    %83 = arith.subf %81, %82 : vector<1x256xf32>
    %cst_32 = arith.constant 1.000000e+00 : f32
    %84 = vector.broadcast %cst_32 : f32 to vector<1x256xf32>
    %85 = arith.addf %82, %84 : vector<1x256xf32>
    %cst_33 = arith.constant 8.000000e+00 : f32
    %86 = vector.broadcast %cst_33 : f32 to vector<1x256xf32>
    %87 = arith.cmpf oge, %85, %86 : vector<1x256xf32>
    %cst_34 = arith.constant 1.000000e+00 : f32
    %88 = vector.broadcast %cst_34 : f32 to vector<1x256xf32>
    %89 = arith.subf %88, %83 : vector<1x256xf32>
    %cst_35 = arith.constant 0.000000e+00 : f32
    %90 = vector.broadcast %cst_35 : f32 to vector<1x256xf32>
    %91 = arith.select %87, %83, %90 : vector<1x256xi1>, vector<1x256xf32>
    %92 = arith.addf %89, %91 : vector<1x256xf32>
    %cst_36 = arith.constant 0.000000e+00 : f32
    %93 = vector.broadcast %cst_36 : f32 to vector<1x256xf32>
    %94 = arith.select %87, %93, %83 : vector<1x256xi1>, vector<1x256xf32>
    %cst_37 = arith.constant 1.000000e+00 : f32
    %95 = vector.broadcast %cst_37 : f32 to vector<1x256xf32>
    %96 = arith.addf %82, %95 : vector<1x256xf32>
    %97 = vector.broadcast %96 : vector<1x256xf32> to vector<8x256xf32>
    %98 = vector.broadcast %71 : vector<8x1xf32> to vector<8x256xf32>
    %99 = arith.mulf %97, %98 : vector<8x256xf32>
    %100 = math.exp %99 : vector<8x256xf32>
    %101 = vector.broadcast %94 : vector<1x256xf32> to vector<8x256xf32>
    %102 = vector.broadcast %70 : vector<8x1xf32> to vector<8x256xf32>
    %103 = arith.mulf %101, %102 : vector<8x256xf32>
    %104 = vector.broadcast %92 : vector<1x256xf32> to vector<8x256xf32>
    %105 = arith.addf %104, %103 : vector<8x256xf32>
    %106 = arith.mulf %100, %105 : vector<8x256xf32>
    %c0_38 = arith.constant 0 : index
    %c0_39 = arith.constant 0 : index
    %c0_40 = arith.constant 0 : index
    %107 = vector.load %arg6[%c0_38, %c0_39, %c0_40] : memref<2x8x256xf32, #tpu.memory_space<vmem>>, vector<1x8x256xf32>
    %108 = vector.shape_cast %107 : vector<1x8x256xf32> to vector<8x256xf32>
    %109 = vector.shape_cast %106 : vector<8x256xf32> to vector<1x8x256xf32>
    tpu.vector_store %arg6[%c0_38, %c0_39, %c0_40], %109 {strides = array<i32>} : memref<2x8x256xf32, #tpu.memory_space<vmem>>, vector<1x8x256xf32>,
    %cst_41 = arith.constant 1.000000e+00 : f32
    %110 = vector.broadcast %cst_41 : f32 to vector<8x256xf32>
    %111 = arith.subf %110, %106 : vector<8x256xf32>
    %c1_42 = arith.constant 1 : index
    %c0_43 = arith.constant 0 : index
    %c0_44 = arith.constant 0 : index
    %112 = vector.load %arg6[%c1_42, %c0_43, %c0_44] : memref<2x8x256xf32, #tpu.memory_space<vmem>>, vector<1x8x256xf32>
    %113 = vector.shape_cast %112 : vector<1x8x256xf32> to vector<8x256xf32>
    %114 = vector.shape_cast %111 : vector<8x256xf32> to vector<1x8x256xf32>
    tpu.vector_store %arg6[%c1_42, %c0_43, %c0_44], %114 {strides = array<i32>} : memref<2x8x256xf32, #tpu.memory_space<vmem>>, vector<1x8x256xf32>,
    return
  }
  func.func @transform_0(%arg0: i32) -> (i32, i32) {
    %c0_i32 = arith.constant 0 : i32
    %c0_i32_0 = arith.constant 0 : i32
    return %arg0, %c0_i32 : i32, i32
  }
  func.func @transform_1(%arg0: i32) -> (i32, i32) {
    %c0_i32 = arith.constant 0 : i32
    %c0_i32_0 = arith.constant 0 : i32
    return %arg0, %c0_i32 : i32, i32
  }
  func.func @transform_2(%arg0: i32) -> (i32, i32) {
    %c0_i32 = arith.constant 0 : i32
    %c0_i32_0 = arith.constant 0 : i32
    return %arg0, %c0_i32 : i32, i32
  }
  func.func @transform_3(%arg0: i32) -> (i32, i32, i32) {
    %c0_i32 = arith.constant 0 : i32
    %c0_i32_0 = arith.constant 0 : i32
    %c0_i32_1 = arith.constant 0 : i32
    return %c0_i32, %arg0, %c0_i32_0 : i32, i32, i32
  }
  func.func @transform_4(%arg0: i32) -> (i32, i32, i32) {
    %c0_i32 = arith.constant 0 : i32
    %c0_i32_0 = arith.constant 0 : i32
    %c0_i32_1 = arith.constant 0 : i32
    return %c0_i32, %arg0, %c0_i32_0 : i32, i32, i32
  }
  func.func @transform_5(%arg0: i32) -> (i32, i32, i32) {
    %c0_i32 = arith.constant 0 : i32
    %c0_i32_0 = arith.constant 0 : i32
    %c0_i32_1 = arith.constant 0 : i32
    return %c0_i32, %arg0, %c0_i32_0 : i32, i32, i32
  }
}

</mosaic_0001>

<bundles_post_ra>
// kernel: evolving_filtered_resonance_forward.1
= control target key start
LH: loop header
LB: loop body
LE: loop exit
PB: predicated region body
PF: predicated region fallthrough
CT: control target
= control target key end

     0   :  { %v210_v0 = vmov 0   ;;  %v211_v2 = vmov 1   ;;  %v212_v7 = vmov 2   ;;  %v213_v8 = vmov 4   ;;  %s312_s0 = inlined_call_operand.vmem [shape: f32[8,8], index: 0, kind: input, shape index: {}]   ;;  %s313_s1 = inlined_call_operand.vmem [shape: f32[8,256], index: 1, kind: input, shape index: {}]   ;;  %s314_s2 = inlined_call_operand.vmem [shape: f32[8,256], index: 2, kind: input, shape index: {}]   ;;  %s315_s3 = inlined_call_operand.vmem [shape: f32[2,8,256], index: 3, kind: output, shape index: {0}]   ;;  %s316_s4 = inlined_call_operand.vmem [shape: f32[2,8,256], index: 4, kind: output, shape index: {1}]   ;;  %s317_s5 = inlined_call_operand.vmem [shape: f32[2,8,256], index: 5, kind: output, shape index: {2}]  }
   0x1   :  { %184 = vset.pattern.permute.xlu0 %v210_v0  ;;  %v21_v1 = vld [vmem:[%s312_s0] sm:$0xff]  ;;  %186 = vset.pattern.permute.xlu1 %v211_v2  ;;  %v214_v18 = vmov 3   ;;  %v22_v19 = vlaneseq  ;;  %v261_v46 = vld [vmem:[%s313_s1 + $0x8] sm:$0xff] }
   0x2   :  { %36 = vperm.xlu0 %184, %v21_v1   ;;  %v29_v3 = vmul.f32 2.0, %v21_v1  ;;  %v174_v4 = vmul.f32 -1.442695, %v21_v1  ;;  %v251_v44 = vld [vmem:[%s313_s1] sm:$0xff]  ;;  %v266_v47 = vld [vmem:[%s314_s2 + $0x8] sm:$0xff] }
   0x3   :  { %v23_v20 = vand.u32 127, %v22_v19  ;;  %v256_v45 = vld [vmem:[%s314_s2] sm:$0xff] }
   0x4   :  { %190 = vpow2.f32 %v174_v4  ;;  %v30_v5 = vmul.f32 %v29_v3, %v21_v1 }
   0x5   :  { %v24_v21 = vadd.s32 128, %v23_v20  ;;  %v25_v22 = vcvt.s32.f32 %v23_v20 }
   0x6   :  { %v31_v6 = vadd.f32 1e-12, %v30_v5  ;;  %185 = vset.pattern.permute.xlu0 %v212_v7 }
   0x7   :  { %65 = vperm.xlu0 %185, %v21_v1   ;;  %v26_v23 = vcvt.s32.f32 %v24_v21  ;;  %v27_v24 = vmul.f32 0.0078125, %v25_v22  ;;  %v105_v38 = vadd.f32 0.5, %v25_v22 }
   0x8   :  { %192 = vrcp.f32 %v31_v6 }
   0x9   :  { %v28_v25 = vmul.f32 0.0078125, %v26_v23  ;;  %v106_v39 = vadd.f32 0.5, %v26_v23  ;;  %v107_v40 = vmul.f32 0.03125, %v105_v38 }
   0xb   :  { %189 = vset.pattern.permute.xlu0 %v213_v8  ;;  %v108_v41 = vmul.f32 0.03125, %v106_v39  ;;  %v175_v42 = vadd.f32 -0.5, %v107_v40 }
   0xd   :  { %v176_v43 = vadd.f32 -0.5, %v108_v41  ;;  %v111_v52 = vmax.f32 %v175_v42, 0.0 }
   0xe   :  { %v191_v9 = vpop.eup %190 }
   0xf   :  { %v97_v10 = vadd.f32 1.0, %v191_v9  ;;  %v112_v53 = vmax.f32 %v176_v43, 0.0  ;;  %v113_v57 = vfloor.f32 %v111_v52 }
  0x11   :  { %194 = vrcp.f32 %v97_v10  ;;  %v114_v58 = vfloor.f32 %v112_v53  ;;  %v117_v61 = vadd.f32 1.0, %v113_v57  ;;  %v115_v2 = vsub.f32 %v111_v52, %v113_v57 }
  0x12   :  { %v193_v11 = vpop.eup %192 }
  0x13   :  { %47 = vperm.xlu1 %186, %v193_v11   ;;  %v118_v62 = vadd.f32 1.0, %v114_v58  ;;  %v116_v3 = vsub.f32 %v112_v53, %v114_v58  ;;  %vm119_vm0 = vcmp.ge.f32.partialorder %v117_v61, 8.0  ;;  %v121_v10 = vsub.f32 1.0, %v115_v2 }
  0x15   :  { %vm120_vm1 = vcmp.ge.f32.partialorder %v118_v62, 8.0 }
  0x16   :  { %v128_v19 = vsel %vm120_vm1, 0.0, %v116_v3 }
  0x17   :  { %187 = vset.pattern.permute.xlu1 %v213_v8 }
  0x1b   :  { %v195_v12 = vpop.eup %194 }
  0x1c   :  { %v100_v13 = vmul.f32 0.9408, %v195_v12 }
  0x1e   :  { %v101_v14 = vadd.f32 0.02, %v100_v13  ;;  %v123_v13 = vsel %vm119_vm0, %v115_v2, 0.0 }
  0x1f   :  { %v125_v22 = vadd.f32 %v123_v13, %v121_v10 }
  0x20   :  { %v102_v15 = vadd.f32 1e-12, %v101_v14  ;;  %v124_v14 = vsel %vm120_vm1, %v116_v3, 0.0 }
  0x22   :  { %196 = vlog2.f32 %v102_v15  ;;  %142 = vperm.xlu0 %189, %v102_v15   ;;  %v127_v15 = vsel %vm119_vm0, 0.0, %v115_v2 }
  0x2c   :  { %v197_v16 = vpop.eup %196 }
  0x2d   :  { %v104_v17 = vmul.f32 0.6931472, %v197_v16 }
  0x2f   :  { %131 = vperm.xlu1 %187, %v104_v17  }
  0x33   :  { %188 = vset.pattern.permute.xlu1 %v214_v18 }
  0x34   :  { %75 = vperm.xlu1 %188, %v193_v11   ;;  %v122_v11 = vsub.f32 1.0, %v116_v3 }
  0x81   :  { %v37_v26 = vpop.permute.xlu0 %36 }
  0x82   :  { %v39_v27 = vsub.f32 %v27_v24, %v37_v26  ;;  %v40_v28 = vsub.f32 %v28_v25, %v37_v26 }
  0x84   :  { %v41_v29 = vmul.f32 %v39_v27, %v39_v27  ;;  %v42_v30 = vmul.f32 %v40_v28, %v40_v28 }
  0x86   :  { %v43_v31 = vsub.f32 0.0, %v41_v29  ;;  %v44_v32 = vsub.f32 0.0, %v42_v30  ;;  %v66_v56 = vpop.permute.xlu0 %65 }
  0x87   :  { %v68_v59 = vsub.f32 %v27_v24, %v66_v56  ;;  %v69_v60 = vsub.f32 %v28_v25, %v66_v56  ;;  %v126_v24 = vadd.f32 %v124_v14, %v122_v11 }
  0x89   :  { %v70_v63 = vmul.f32 %v68_v59, %v68_v59  ;;  %v71_v0 = vmul.f32 %v69_v60, %v69_v60 }
  0x8b   :  { %v72_v6 = vsub.f32 0.0, %v70_v63  ;;  %v73_v7 = vsub.f32 0.0, %v71_v0 }
  0x92   :  { %v48_v33 = vpop.permute.xlu1 %47 }
  0x93   :  { %v50_v34 = vmul.f32 %v48_v33, %v43_v31  ;;  %v51_v35 = vmul.f32 %v48_v33, %v44_v32 }
  0x95   :  { %v52_v36 = vmul.f32 1.442695, %v50_v34  ;;  %v54_v37 = vmul.f32 1.442695, %v51_v35 }
  0x97   :  { %198 = vpow2.f32 %v52_v36 }
  0x98   :  { %200 = vpow2.f32 %v54_v37 }
  0xa1   :  { %v199_v48 = vpop.eup %198  ;;  %v143_v16 = vpop.permute.xlu0 %142 }
  0xa2   :  { %v201_v49 = vpop.eup %200  ;;  %v56_v50 = vmul.f32 %v199_v48, %v251_v44  ;;  %v60_v51 = vmul.f32 %v199_v48, %v256_v45  ;;  %v145_v23 = vmul.f32 %v143_v16, %v127_v15  ;;  %v146_v25 = vmul.f32 %v143_v16, %v128_v19 }
  0xa3   :  { %v57_v54 = vmul.f32 %v201_v49, %v261_v46  ;;  %v61_v55 = vmul.f32 %v201_v49, %v266_v47 }
  0xa4   :  { %58 = vst [vmem:[%s315_s3] sm:$0xff] %v56_v50  ;;  %62 = vst [vmem:[%s316_s4] sm:$0xff] %v60_v51  ;;  %v147_v26 = vadd.f32 %v145_v23, %v125_v22  ;;  %v148_v27 = vadd.f32 %v146_v25, %v126_v24 }
  0xa5   :  { %59 = vst [vmem:[%s315_s3 + $0x8] sm:$0xff] %v57_v54  ;;  %63 = vst [vmem:[%s316_s4 + $0x8] sm:$0xff] %v61_v55 }
  0xae   :  { %v132_v1 = vpop.permute.xlu1 %131 }
  0xaf   :  { %v134_v4 = vmul.f32 %v132_v1, %v117_v61  ;;  %v135_v5 = vmul.f32 %v132_v1, %v118_v62 }
  0xb1   :  { %v136_v8 = vmul.f32 1.442695, %v134_v4  ;;  %v138_v9 = vmul.f32 1.442695, %v135_v5 }
  0xb3   :  { %202 = vpow2.f32 %v136_v8  ;;  %v76_v12 = vpop.permute.xlu1 %75 }
  0xb4   :  { %204 = vpow2.f32 %v138_v9  ;;  %v78_v17 = vmul.f32 %v76_v12, %v72_v6  ;;  %v79_v18 = vmul.f32 %v76_v12, %v73_v7 }
  0xb6   :  { %v80_v20 = vmul.f32 1.442695, %v78_v17  ;;  %v82_v21 = vmul.f32 1.442695, %v79_v18 }
  0xb8   :  { %206 = vpow2.f32 %v80_v20 }
  0xb9   :  { %208 = vpow2.f32 %v82_v21 }
  0xbd   :  { %v203_v28 = vpop.eup %202 }
  0xbe   :  { %v205_v29 = vpop.eup %204  ;;  %v149_v30 = vmul.f32 %v203_v28, %v147_v26 }
  0xbf   :  { %v150_v31 = vmul.f32 %v205_v29, %v148_v27 }
  0xc0   :  { %151 = vst [vmem:[%s317_s5] sm:$0xff] %v149_v30  ;;  %v153_v32 = vsub.f32 1.0, %v149_v30 }
  0xc1   :  { %152 = vst [vmem:[%s317_s5 + $0x8] sm:$0xff] %v150_v31  ;;  %v154_v33 = vsub.f32 1.0, %v150_v31 }
  0xc2   :  { %v207_v34 = vpop.eup %206  ;;  %177 = vst [vmem:[%s317_s5 + $0x10] sm:$0xff] %v153_v32 }
  0xc3   :  { %v209_v35 = vpop.eup %208  ;;  %v84_v36 = vmul.f32 %v207_v34, %v251_v44  ;;  %v89_v37 = vmul.f32 %v207_v34, %v256_v45  ;;  %178 = vst [vmem:[%s317_s5 + $0x18] sm:$0xff] %v154_v33 }
  0xc4   :  { %v85_v38 = vmul.f32 %v209_v35, %v261_v46  ;;  %v90_v39 = vmul.f32 %v209_v35, %v266_v47 }
  0xc5   :  { %170 = vst [vmem:[%s315_s3 + $0x10] sm:$0xff] %v84_v36  ;;  %172 = vst [vmem:[%s316_s4 + $0x10] sm:$0xff] %v89_v37 }
  0xc6   :  { %171 = vst [vmem:[%s315_s3 + $0x18] sm:$0xff] %v85_v38  ;;  %173 = vst [vmem:[%s316_s4 + $0x18] sm:$0xff] %v90_v39 }

// kernel: reverse.0
= control target key start
LH: loop header
LB: loop body
LE: loop exit
PB: predicated region body
PF: predicated region fallthrough
CT: control target
= control target key end

     0   :  { %v2_v0 = vlaneseq  ;;  %s117_s0 = inlined_call_operand.vmem [shape: f32[2,8,127], index: 0, kind: input, shape index: {}]   ;;  %s118_s1 = inlined_call_operand.vmem [shape: f32[2,8,127], index: 1, kind: output, shape index: {}]  }
   0x1   :  { %v34_v2 = vld [vmem:[%s117_s0] sm:$0xff]  ;;  %v36_v3 = vld [vmem:[%s117_s0 + $0x8] sm:$0xff] }
   0x2   :  { %v3_v1 = vsub.s32 126, %v2_v0 }
   0x4   :  { %4 = vset.pattern.permute.xlu0 %v3_v1 }
   0x5   :  { %42 = vperm.xlu0 %4, %v34_v2  }
   0x9   :  { %48 = vperm.xlu0 %4, %v36_v3  }
  0x84   :  { %v43_v4 = vpop.permute.xlu0 %42 }
  0x85   :  { %81 = vst [vmem:[%s118_s1] sm:$0xff] %v43_v4 }
  0x88   :  { %v49_v5 = vpop.permute.xlu0 %48 }
  0x89   :  { %83 = vst [vmem:[%s118_s1 + $0x8] sm:$0xff] %v49_v5 }

// kernel: squeeze.3
= control target key start
LH: loop header
LB: loop body
LE: loop exit
PB: predicated region body
PF: predicated region fallthrough
CT: control target
= control target key end

     0   :  { %2 = vsyncpa [#allocation1], 0  ;;  %s103_s0 = inlined_call_operand.vmem [shape: f32[1,8,256], index: 0, kind: input, shape index: {}]   ;;  %s104_s1 = inlined_call_operand.hbm [shape: f32[2,4,256], index: 1, kind: output, shape index: {}]  }
   0x1   :  { %v3_v0 = vld [vmem:[%s103_s0] sm:$0xff]   ;;  %v48_v1 = vld [vmem:[%s103_s0 + $0x8] sm:$0xff]   ;;  %s74_s0 = smov [#allocation0]  }
   0x2   :  { %4 = vst [vmem:[#allocation2] sm:$0xf] %v3_v0   ;;  %6 = vst [vmem:[#allocation2 + $0xc] sm:$0xf0] %v3_v0   ;;  %s40_s10 = sshll.u32 %s74_s0, 4  ;;  %s41_s10 = int_to_ptr.vmem [resolvable:$true] %s40_s10 }
   0x3   :  { %10 = vst [vmem:[#allocation2 + $0x8] sm:$0xf] %v48_v1   ;;  %12 = vst [vmem:[#allocation2 + $0x14] sm:$0xf0] %v48_v1   ;;  %s50_s11 = scalar_lea.vmem %s41_s10, 256  ;;  %p55_p1 = scmp.lt.s32.totalorder %s41_s10, %s41_s10 }
   0x4   :  { %p51_p0 = scmp.ne.s32.totalorder %s41_s10, %s50_s11  ;;  %p56_p2 = scmp.lt.s32.totalorder %s50_s11, %s50_s11 }
   0x6   :  { %p57_p3 = por %p56_p2, %p55_p1 }
   0x8   :  { %p58_p4 = pnand %p57_p3, %p51_p0 }
   0x9   :  { %v16_v2 = vld [vmem:[#allocation2] sm:$0xf]  ;;  %v25_v4 = vld [vmem:[#allocation2 + $0x10] sm:$0xf] }
   0xa   :  { %v20_v3 = vld [vmem:[#allocation2 + $0x8] sm:$0xf]  ;;  %18 = vst [vmem:[#allocation0] sm:$0xf] %v16_v2  ;;  %29 = vst [vmem:[#allocation0 + $0x8] sm:$0xf] %v25_v4 }
   0xb   :  { %23 = vst [vmem:[#allocation0 + $0x4] sm:$0xf] %v20_v3  ;;  %v31_v5 = vld [vmem:[#allocation2 + $0x18] sm:$0xf] }
   0xc   :  { %35 = vst [vmem:[#allocation0 + $0xc] sm:$0xf] %v31_v5 }
   0xd   :  { %61 = shalt.err (!%p58_p4)
}
   0xe   :  { %s62_s14 = scalar_lea.hbm %s104_s1, 256 }
   0xf   :  { %p63_p5 = scmp.ne.s32.totalorder %s104_s1, %s62_s14  ;;  %p66_p6 = scmp.lt.u32.totalorder %s62_s14, %s104_s1 }
  0x11   :  { %p68_p7 = pnand %p66_p6, %p63_p5 }
  0x13   :  { %71 = shalt.err (!%p68_p7)
}
  0x14   :  { %43 = dma.vmem_to_hbm [thread:$0]  %s41_s10, 256, %s104_s1, [#allocation1]  }
  0x15   :  { %72 = dma.done.wait [#allocation1], 256  }
  0x16   :  { %73 = vsyncadd [#allocation1], 4294967040 }
  0x17   :  { %45 = vsyncpa [#allocation1], 1 }

</bundles_post_ra>
